<compile_context>
chip_gen: v5e
topology: v5e:2x2
jax: 0.10.0
libtpu: 0.0.40
codegen_flags: <defaults>
</compile_context>

<pallas_src>
import numpy as np
import jax
import jax.numpy as jnp
from jax.experimental import pallas as pl
from jax.experimental.pallas import tpu as pltpu


# Head order exactly as in FeatureNet.forward's torch.cat(...)
_HEAD_ORDER = (
    "throughput",               # conv1d1: Conv1d(1, H, past_k)
    "next_chunk_size",          # conv1d2: Conv1d(num_rates, H, tile_total_num)
    "next_chunk_quality",       # conv1d3: Conv1d(num_rates, H, tile_total_num)
    "pred_viewport",            # conv1d4: Conv1d(1, H, tile_total_num)
    "viewport_acc",             # conv1d5: Conv1d(1, H, past_k)
    "past_viewport_qualities",  # conv1d6: Conv1d(1, H, past_k)
    "past_quality_variances",   # conv1d7: Conv1d(1, H, past_k)
    "past_rebuffering",         # conv1d8: Conv1d(1, H, past_k)
    "buffer",                   # fc1: Linear(1, H)
    "qoe_weight",               # fc2: Linear(3, H)
)


def _round_up(x, m):
    return (x + m - 1) // m * m


def _cdiv(a, b):
    return (a + b - 1) // b


def _feature_net_kernel(x_ref, w_ref, b_ref, out_ref):
    # x_ref:   [TB, F]   bf16 (one batch tile of the concatenated flattened inputs)
    # w_ref:   [F, 10H]  bf16 (block-diagonal fused weights, VMEM-resident)
    # b_ref:   [1, 10H]  f32  (concatenated biases, VMEM-resident)
    # out_ref: [TB, 10H] bf16
    acc = jnp.dot(x_ref[...], w_ref[...], preferred_element_type=jnp.float32)
    acc = acc + b_ref[...]
    # LeakyReLU (negative_slope=0.01); epilogue in f32 (v5e has no bf16 VPU/EUP),
    # then cast to bf16 at the store to halve the dominant HBM write stream.
    out_ref[...] = jnp.where(acc > 0, acc, jnp.float32(0.01) * acc).astype(out_ref.dtype)


def prepare_feature_net_params(params, hidden_dim):
    """One-time, host-side fusion of the 10 per-head weights.

    params: dict name -> (w_flat [f_i, H], b [H]) per head, where for a conv head
            w_flat = conv_weight.reshape(H, C*K).T.
    Returns (w_bd [F, 10H] bf16 block-diagonal weight, b_cat [1, 10H] f32 bias).
    Call ONCE and reuse across steps — this keeps the block-diagonal build and the
    bf16 cast out of the per-call forward path.
    """
    ws = [np.asarray(params[k][0], np.float32) for k in _HEAD_ORDER]
    bs = [np.asarray(params[k][1], np.float32) for k in _HEAD_ORDER]
    F = sum(w.shape[0] for w in ws)
    N = len(ws) * hidden_dim
    w_bd = np.zeros((F, N), np.float32)
    off = 0
    for i, w in enumerate(ws):
        w_bd[off:off + w.shape[0], i * hidden_dim:(i + 1) * hidden_dim] = w
        off += w.shape[0]
    b_cat = np.concatenate(bs)[None, :]
    return (jnp.asarray(w_bd, dtype=jnp.bfloat16),
            jnp.asarray(b_cat, dtype=jnp.float32))


def _choose_tb(B):
    """Adaptive batch tile (multiple of 16 for bf16 sublane packing)."""
    if B <= 512:
        # Small batch: single grid step; per-step overhead (~0.35us) dominates any
        # split and one TC is plenty.
        return _round_up(max(B, 8), 16)
    if B <= 4096:
        # Two steps so dimension_semantics=("parallel",) can shard across the two
        # TensorCores on v7x (harmless on v5e/v6e which have one TC).
        return _round_up(_cdiv(B, 2), 16)
    # Large batch: ~2048-row tiles, >= 4 grid steps.
    n_steps = max(4, _cdiv(B, 2048))
    return _round_up(_cdiv(B, n_steps), 16)


@jax.jit
def _fused_forward(inputs, w_bf16, b_cat):
    n_heads = len(_HEAD_ORDER)
    B = inputs[0].shape[0]
    N = b_cat.shape[1]
    H = N // n_heads

    # concat + bf16 cast (+ tail pad) fuse into a single XLA pass under this jit —
    # one HBM write of x before the kernel instead of 2-3 separate round-trips.
    x = jnp.concatenate([xi.astype(jnp.bfloat16) for xi in inputs], axis=-1)
    F = x.shape[1]

    tb = _choose_tb(B)
    b_pad = _round_up(B, tb)
    if b_pad != B:
        x = jnp.pad(x, ((0, b_pad - B), (0, 0)))
    grid = (b_pad // tb,)

    # Rough VMEM budget: double-buffered x/out tiles + (double-buffered) resident W/b.
    vmem_bytes = 2 * (tb * F * 2) + 2 * (tb * N * 2) + 2 * (F * N * 2 + N * 4)
    cp_kwargs = {}
    if vmem_bytes > 32 * 1024 * 1024:   # above default scoped limit (v6e/v7x)
        try:
            phys = pltpu.get_tpu_info().vmem_capacity_bytes
        except Exception:               # conservative: v7x per-TC physical VMEM
            phys = 64 * 1024 * 1024
        cp_kwargs["vmem_limit_bytes"] = min(vmem_bytes * 5 // 4,
                                            phys - 8 * 1024 * 1024)

    out = pl.pallas_call(
        _feature_net_kernel,
        out_shape=jax.ShapeDtypeStruct((b_pad, N), jnp.bfloat16),
        grid=grid,
        in_specs=[
            pl.BlockSpec((tb, F), lambda i: (i, 0)),   # batch-tiled input
            pl.BlockSpec((F, N), lambda i: (0, 0)),    # resident weights
            pl.BlockSpec((1, N), lambda i: (0, 0)),    # resident bias
        ],
        out_specs=pl.BlockSpec((tb, N), lambda i: (i, 0)),
        compiler_params=pltpu.CompilerParams(
            dimension_semantics=("parallel",), **cp_kwargs),
        cost_estimate=pl.CostEstimate(
            flops=2 * b_pad * F * H,      # effective flops (zero blocks excluded)
            transcendentals=0,
            bytes_accessed=(b_pad * F * 2 + F * N * 2 + N * 4 + b_pad * N * 2)),
    )(x, w_bf16, b_cat)

    features = out[:B]
    qoe_weight_features = features[:, (n_heads - 1) * H:]
    return features, qoe_weight_features


def feature_net_forward(observation, fused_w, fused_b):
    """FeatureNet forward pass.

    observation: dict name -> [B, ...] f32 array (device arrays).
    fused_w/fused_b: output of prepare_feature_net_params().
    Returns (features [B, 10*H] bf16, qoe_weight_features [B, H] bf16).
    """
    # TODO(synk): the torch.from_numpy(...).to(device) host transfers of the original
    #             module are outside kernel scope; observation entries are assumed to
    #             be jnp arrays already placed on the TPU.
    inputs = tuple(observation[k].reshape(observation[k].shape[0], -1)
                   for k in _HEAD_ORDER)
    return _fused_forward(inputs, fused_w, fused_b)


def _init_conv1d(key, in_ch, hidden, kernel):
    # PyTorch Conv1d(in_ch, hidden, kernel) applied to an input of length == kernel
    # is an affine map on the flattened input:
    #   y = x.reshape(B, in_ch*kernel) @ conv_weight.reshape(hidden, in_ch*kernel).T + b
    kw, kb = jax.random.split(key)
    bound = 1.0 / jnp.sqrt(jnp.float32(in_ch * kernel))
    w_conv = jax.random.uniform(kw, (hidden, in_ch, kernel), jnp.float32, -bound, bound)
    b = jax.random.uniform(kb, (hidden,), jnp.float32, -bound, bound)
    return w_conv.reshape(hidden, in_ch * kernel).T, b


def _init_linear(key, fan_in, hidden):
    kw, kb = jax.random.split(key)
    bound = 1.0 / jnp.sqrt(jnp.float32(fan_in))
    w = jax.random.uniform(kw, (fan_in, hidden), jnp.float32, -bound, bound)
    b = jax.random.uniform(kb, (hidden,), jnp.float32, -bound, bound)
    return w, b


if __name__ == "__main__":
    B = 6               # not a multiple of the batch tile -> exercises tail padding
    past_k = 8
    tile_total_num = 16
    num_rates = 4
    hidden_dim = 32

    key = jax.random.PRNGKey(0)
    keys = jax.random.split(key, 20)
    k = iter(keys)

    observation = {
        "throughput": jax.random.normal(next(k), (B, 1, past_k), jnp.float32),
        "next_chunk_size": jax.random.normal(next(k), (B, num_rates, tile_total_num), jnp.float32),
        "next_chunk_quality": jax.random.normal(next(k), (B, num_rates, tile_total_num), jnp.float32),
        "pred_viewport": jax.random.normal(next(k), (B, 1, tile_total_num), jnp.float32),
        "viewport_acc": jax.random.normal(next(k), (B, 1, past_k), jnp.float32),
        "past_viewport_qualities": jax.random.normal(next(k), (B, 1, past_k), jnp.float32),
        "past_quality_variances": jax.random.normal(next(k), (B, 1, past_k), jnp.float32),
        "past_rebuffering": jax.random.normal(next(k), (B, 1, past_k), jnp.float32),
        "buffer": jax.random.normal(next(k), (B, 1), jnp.float32),
        "qoe_weight": jax.random.normal(next(k), (B, 3), jnp.float32),
    }

    params = {
        "throughput": _init_conv1d(next(k), 1, hidden_dim, past_k),
        "next_chunk_size": _init_conv1d(next(k), num_rates, hidden_dim, tile_total_num),
        "next_chunk_quality": _init_conv1d(next(k), num_rates, hidden_dim, tile_total_num),
        "pred_viewport": _init_conv1d(next(k), 1, hidden_dim, tile_total_num),
        "viewport_acc": _init_conv1d(next(k), 1, hidden_dim, past_k),
        "past_viewport_qualities": _init_conv1d(next(k), 1, hidden_dim, past_k),
        "past_quality_variances": _init_conv1d(next(k), 1, hidden_dim, past_k),
        "past_rebuffering": _init_conv1d(next(k), 1, hidden_dim, past_k),
        "buffer": _init_linear(next(k), 1, hidden_dim),
        "qoe_weight": _init_linear(next(k), 3, hidden_dim),
    }

    # One-time fused-parameter build (host side), reused across every forward call.
    fused_w, fused_b = prepare_feature_net_params(params, hidden_dim)

    features, qoe_weight_features = feature_net_forward(observation, fused_w, fused_b)
    features = jax.block_until_ready(features)
    qoe_weight_features = jax.block_until_ready(qoe_weight_features)

    # Pure-JAX reference: per-head Linear + LeakyReLU with the same bf16 operands /
    # f32 accumulation; compared against the kernel's bf16 output with bf16-level
    # tolerance.
    ref_blocks = []
    for name in _HEAD_ORDER:
        x_h = observation[name].reshape(B, -1).astype(jnp.bfloat16)
        w_h, b_h = params[name]
        h = jnp.dot(x_h, w_h.astype(jnp.bfloat16),
                    preferred_element_type=jnp.float32) + b_h[None, :]
        ref_blocks.append(jnp.where(h > 0, h, 0.01 * h))
    ref_features = jnp.concatenate(ref_blocks, axis=-1)

    n_heads = len(_HEAD_ORDER)
    assert features.shape == (B, n_heads * hidden_dim)
    assert qoe_weight_features.shape == (B, hidden_dim)
    assert features.dtype == jnp.bfloat16

    feat_f32 = features.astype(jnp.float32)
    qoe_f32 = qoe_weight_features.astype(jnp.float32)
    assert jnp.allclose(feat_f32, ref_features, atol=5e-2, rtol=2e-2), \
        float(jnp.max(jnp.abs(feat_f32 - ref_features)))
    assert jnp.allclose(qoe_f32, ref_blocks[-1], atol=5e-2, rtol=2e-2)

    print("KERNEL_OK")
</pallas_src>

<mosaic_0001>
module attributes {stable_mosaic.version = 11 : i64} {
  func.func @_feature_net_kernel(%arg0: i32, %arg1: memref<16x188xbf16, #tpu.memory_space<vmem>>, %arg2: memref<188x320xbf16, #tpu.memory_space<vmem>>, %arg3: memref<1x320xf32, #tpu.memory_space<vmem>>, %arg4: memref<16x320xbf16, #tpu.memory_space<vmem>>) attributes {dimension_semantics = [#tpu.dimension_semantics<parallel>], iteration_bounds = array<i64: 1>, scalar_prefetch = 0 : i64, scratch_operands = 0 : i64, tpu.core_type = #tpu.core_type<tc>, window_params = [{transform_indices = @transform_0, window_bounds = array<i64: 16, 188>}, {pipeline_mode = #tpu.pipeline_mode<synchronous>, transform_indices = @transform_1, window_bounds = array<i64: 188, 320>}, {pipeline_mode = #tpu.pipeline_mode<synchronous>, transform_indices = @transform_2, window_bounds = array<i64: 1, 320>}, {transform_indices = @transform_3, window_bounds = array<i64: 16, 320>}]} {
    %c0 = arith.constant 0 : index
    %c0_0 = arith.constant 0 : index
    %0 = vector.load %arg1[%c0, %c0_0] : memref<16x188xbf16, #tpu.memory_space<vmem>>, vector<16x188xbf16>
    %c0_1 = arith.constant 0 : index
    %c0_2 = arith.constant 0 : index
    %1 = vector.load %arg2[%c0_1, %c0_2] : memref<188x320xbf16, #tpu.memory_space<vmem>>, vector<188x320xbf16>
    %cst = arith.constant dense<0.000000e+00> : vector<16x320xf32>
    %2 = tpu.matmul %0, %1, %cst {dimension_numbers = #tpu.dot_dimension_numbers<[1], [0], [0], [1], [0, 0, 1, 1], [], []>} : vector<16x188xbf16>, vector<188x320xbf16>, vector<16x320xf32> -> vector<16x320xf32>
    %c0_3 = arith.constant 0 : index
    %c0_4 = arith.constant 0 : index
    %3 = vector.load %arg3[%c0_3, %c0_4] : memref<1x320xf32, #tpu.memory_space<vmem>>, vector<1x320xf32>
    %4 = vector.broadcast %3 : vector<1x320xf32> to vector<16x320xf32>
    %5 = arith.addf %2, %4 : vector<16x320xf32>
    %cst_5 = arith.constant 0.000000e+00 : f32
    %6 = vector.broadcast %cst_5 : f32 to vector<16x320xf32>
    %7 = arith.cmpf ogt, %5, %6 : vector<16x320xf32>
    %cst_6 = arith.constant 0.00999999977 : f32
    %8 = vector.broadcast %cst_6 : f32 to vector<16x320xf32>
    %9 = arith.mulf %8, %5 : vector<16x320xf32>
    %10 = arith.select %7, %5, %9 : vector<16x320xi1>, vector<16x320xf32>
    %11 = arith.truncf %10 : vector<16x320xf32> to vector<16x320xbf16>
    %c0_7 = arith.constant 0 : index
    %c0_8 = arith.constant 0 : index
    %12 = vector.load %arg4[%c0_7, %c0_8] : memref<16x320xbf16, #tpu.memory_space<vmem>>, vector<16x320xbf16>
    tpu.vector_store %arg4[%c0_7, %c0_8], %11 {strides = array<i32>} : memref<16x320xbf16, #tpu.memory_space<vmem>>, vector<16x320xbf16>,
    return
  }
  func.func @transform_0(%arg0: i32) -> (i32, i32) {
    %c0_i32 = arith.constant 0 : i32
    %c0_i32_0 = arith.constant 0 : i32
    return %arg0, %c0_i32 : i32, i32
  }
  func.func @transform_1(%arg0: i32) -> (i32, i32) {
    %c0_i32 = arith.constant 0 : i32
    %c0_i32_0 = arith.constant 0 : i32
    %c0_i32_1 = arith.constant 0 : i32
    return %c0_i32, %c0_i32_0 : i32, i32
  }
  func.func @transform_2(%arg0: i32) -> (i32, i32) {
    %c0_i32 = arith.constant 0 : i32
    %c0_i32_0 = arith.constant 0 : i32
    %c0_i32_1 = arith.constant 0 : i32
    return %c0_i32, %c0_i32_0 : i32, i32
  }
  func.func @transform_3(%arg0: i32) -> (i32, i32) {
    %c0_i32 = arith.constant 0 : i32
    %c0_i32_0 = arith.constant 0 : i32
    return %arg0, %c0_i32 : i32, i32
  }
}

</mosaic_0001>

<bundles_post_ra>
// kernel: _fused_forward.1
= control target key start
LH: loop header
LB: loop body
LE: loop exit
PB: predicated region body
PF: predicated region fallthrough
CT: control target
= control target key end

     0   :  { %8 = vsyncpa [#allocation3], 0  ;;  %s639_s15 = smov [#allocation2]   ;;  %s640_s17 = smov 192   ;;  %s703_s0 = inlined_call_operand.vmem [shape: bf16[16,188], index: 0, kind: input, shape index: {}]   ;;  %s704_s1 = inlined_call_operand.hbm [shape: bf16[188,320], index: 1, kind: input, shape index: {}]   ;;  %s705_s2 = inlined_call_operand.vmem [shape: f32[1,320], index: 2, kind: input, shape index: {}]   ;;  %s706_s3 = inlined_call_operand.vmem [shape: bf16[16,320], index: 3, kind: output, shape index: {}]  }
   0x1   :  { %s15_s14 = sshll.u32 %s704_s1, 4  ;;  %s17_s16 = sshll.u32 %s639_s15, 4  ;;  %s16_s14 = int_to_ptr.hbm [resolvable:$true] %s15_s14  ;;  %s18_s16 = int_to_ptr.vmem [resolvable:$true] %s17_s16 }
   0x2   :  { %s641_s18 = smov 12  }
   0x3   :  { %23 = dma.hbm_to_vmem [thread:$0]  %s16_s14, 4608, %s18_s16, [#allocation3], %s640_s17, %s640_s17, %s641_s18  }
   0x4   :  { %637 = dma.done.wait [#allocation3], 4608  }
   0x5   :  { %638 = vsyncadd [#allocation3], 4294962688  ;;  %vm291_vm0 = vcmask 1045504   ;;  %v511_v0 = vld [vmem:[#allocation2 + $0xa8] sm:$0xf]  ;;  %vm287_vm1 = vcmask 490496  }
   0x6   :  { %v596_v1 = vld [vmem:[#allocation2 + $0xb0] sm:$0xf0]  ;;  %v595_v2 = vld [vmem:[#allocation2 + $0xac] sm:$0xf]  ;;  %v513_v4 = vld [vmem:[#allocation2 + $0xb4] sm:$0xf0] }
   0x7   :  { %v512_v3 = vor.u32 %v596_v1, %v511_v0  ;;  %v559_v5 = vld [vmem:[#allocation2 + $0x108] sm:$0xf]  ;;  %v608_v6 = vld [vmem:[#allocation2 + $0x110] sm:$0x30]  ;;  %v516_v7 = vor.u32 %v595_v2, %v513_v4  ;;  %v607_v9 = vld [vmem:[#allocation2 + $0x10c] sm:$0xf] }
   0x8   :  { %v560_v8 = vor.u32 %v608_v6, %v559_v5  ;;  %v561_v10 = vld [vmem:[#allocation2 + $0x114] sm:$0x30]  ;;  %v499_v11 = vld [vmem:[#allocation2 + $0x90] sm:$0xf]  ;;  %v593_v13 = vld [vmem:[#allocation2 + $0x98] sm:$0xf0] }
   0x9   :  { %301 = vmatpush.bf16.msra.mxu0 %v512_v3  ;;  %v564_v12 = vor.u32 %v607_v9, %v561_v10  ;;  %v592_v14 = vld [vmem:[#allocation2 + $0x94] sm:$0xf]  ;;  %v501_v15 = vld [vmem:[#allocation2 + $0x9c] sm:$0xf0]  ;;  %329 = vmatpush.bf16.msra.mxu2 %v516_v7  ;;  %v500_v17 = vor.u32 %v593_v13, %v499_v11  ;;  %v547_v19 = vld [vmem:[#allocation2 + $0xf0] sm:$0xf] }
   0xa   :  { %v293_v16 = vsel %vm291_vm0, %v560_v8, 0  ;;  %v504_v18 = vor.u32 %v592_v14, %v501_v15  ;;  %v605_v20 = vld [vmem:[#allocation2 + $0xf8] sm:$0xf0]  ;;  %v604_v23 = vld [vmem:[#allocation2 + $0xf4] sm:$0xf]  ;;  %vm408_vm7 = vcmask 519168  }
   0xb   :  { %319 = vmatpush.bf16.msra.mxu1 %v293_v16  ;;  %v296_v21 = vsel %vm291_vm0, %v564_v12, 0  ;;  %v548_v22 = vor.u32 %v605_v20, %v547_v19  ;;  %v549_v24 = vld [vmem:[#allocation2 + $0xfc] sm:$0xf0]  ;;  %v487_v26 = vld [vmem:[#allocation2 + $0x78] sm:$0xf] }
   0xc   :  { %347 = vmatpush.bf16.msra.mxu3 %v296_v21  ;;  %v552_v25 = vor.u32 %v604_v23, %v549_v24  ;;  %v590_v27 = vld [vmem:[#allocation2 + $0x80] sm:$0xf0]  ;;  %v589_v28 = vld [vmem:[#allocation2 + $0x7c] sm:$0xf]  ;;  %v489_v30 = vld [vmem:[#allocation2 + $0x84] sm:$0xf0] }
   0xd   :  { %302 = vmatpush.bf16.msra.mxu0 %v500_v17  ;;  %v488_v29 = vor.u32 %v590_v27, %v487_v26  ;;  %v535_v31 = vld [vmem:[#allocation2 + $0xd8] sm:$0xf]  ;;  %v602_v32 = vld [vmem:[#allocation2 + $0xe0] sm:$0xf0]  ;;  %330 = vmatpush.bf16.msra.mxu2 %v504_v18  ;;  %v492_v33 = vor.u32 %v589_v28, %v489_v30  ;;  %v601_v34 = vld [vmem:[#allocation2 + $0xdc] sm:$0xf] }
   0xe   :  { %v537_v35 = vld [vmem:[#allocation2 + $0xe4] sm:$0xf0]  ;;  %v475_v36 = vld [vmem:[#allocation2 + $0x60] sm:$0xf]  ;;  %v536_v37 = vor.u32 %v602_v32, %v535_v31  ;;  %v587_v38 = vld [vmem:[#allocation2 + $0x68] sm:$0xf0] }
   0xf   :  { %320 = vmatpush.bf16.msra.mxu1 %v548_v22  ;;  %v586_v39 = vld [vmem:[#allocation2 + $0x64] sm:$0xf]  ;;  %v477_v40 = vld [vmem:[#allocation2 + $0x6c] sm:$0xf0]  ;;  %v540_v41 = vor.u32 %v601_v34, %v537_v35  ;;  %v523_v42 = vld [vmem:[#allocation2 + $0xc0] sm:$0xf]  ;;  %v476_v45 = vor.u32 %v587_v38, %v475_v36 }
  0x10   :  { %348 = vmatpush.bf16.msra.mxu3 %v552_v25  ;;  %v599_v43 = vld [vmem:[#allocation2 + $0xc8] sm:$0xf0]  ;;  %v598_v44 = vld [vmem:[#allocation2 + $0xc4] sm:$0xf]  ;;  %v525_v46 = vld [vmem:[#allocation2 + $0xcc] sm:$0xf0]  ;;  %v480_v49 = vor.u32 %v586_v39, %v477_v40 }
  0x11   :  { %303 = vmatpush.bf16.msra.mxu0 %v488_v29  ;;  %v519_v47 = vld [vmem:[#allocation2 + $0xb0] sm:$0xf]  ;;  %v597_v48 = vld [vmem:[#allocation2 + $0xb8] sm:$0xf0]  ;;  %331 = vmatpush.bf16.msra.mxu2 %v492_v33  ;;  %v463_v50 = vld [vmem:[#allocation2 + $0x48] sm:$0xf]  ;;  %v524_v52 = vor.u32 %v599_v43, %v523_v42  ;;  %v528_v55 = vor.u32 %v598_v44, %v525_v46 }
  0x12   :  { %v584_v51 = vld [vmem:[#allocation2 + $0x50] sm:$0xf0]  ;;  %v583_v53 = vld [vmem:[#allocation2 + $0x4c] sm:$0xf]  ;;  %v465_v54 = vld [vmem:[#allocation2 + $0x54] sm:$0xf0]  ;;  %v520_v56 = vor.u32 %v597_v48, %v519_v47 }
  0x13   :  { %321 = vmatpush.bf16.msra.mxu1 %v536_v37  ;;  %v572_v57 = vld [vmem:[%s703_s0 + $0x4] sm:$0xf]  ;;  %v421_v58 = vld [vmem:[%s703_s0 + $0x8] sm:$0xf0]  ;;  %v567_v59 = vld [vmem:[#allocation2 + $0x110] sm:$0xf]  ;;  %v464_v60 = vor.u32 %v584_v51, %v463_v50  ;;  %v468_v0 = vor.u32 %v583_v53, %v465_v54 }
  0x14   :  { %349 = vmatpush.bf16.msra.mxu3 %v540_v41  ;;  %v507_v61 = vld [vmem:[#allocation2 + $0x98] sm:$0xf]  ;;  %v594_v62 = vld [vmem:[#allocation2 + $0xa0] sm:$0xf0]  ;;  %v609_v63 = vld [vmem:[#allocation2 + $0x118] sm:$0x30]  ;;  %v673_v5 = vor.u32 %v572_v57, %v421_v58 }
  0x15   :  { %304 = vmatpush.bf16.msra.mxu0 %v476_v45  ;;  %332 = vmatpush.bf16.msra.mxu2 %v480_v49  ;;  %v568_v1 = vor.u32 %v609_v63, %v567_v59  ;;  %v451_v2 = vld [vmem:[#allocation2 + $0x30] sm:$0xf]  ;;  %v581_v3 = vld [vmem:[#allocation2 + $0x38] sm:$0xf0]  ;;  %v580_v4 = vld [vmem:[#allocation2 + $0x34] sm:$0xf]  ;;  %v508_v9 = vor.u32 %v594_v62, %v507_v61 }
  0x16   :  { %v453_v6 = vld [vmem:[#allocation2 + $0x3c] sm:$0xf0]  ;;  %v555_v7 = vld [vmem:[#allocation2 + $0xf8] sm:$0xf]  ;;  %v606_v8 = vld [vmem:[#allocation2 + $0x100] sm:$0xf0]  ;;  %v452_v11 = vor.u32 %v581_v3, %v451_v2 }
  0x17   :  { %322 = vmatpush.bf16.msra.mxu1 %v524_v52  ;;  %v299_v10 = vsel %vm291_vm0, %v568_v1, 0  ;;  %v495_v12 = vld [vmem:[#allocation2 + $0x80] sm:$0xf]  ;;  %v591_v13 = vld [vmem:[#allocation2 + $0x88] sm:$0xf0]  ;;  %v556_v14 = vor.u32 %v606_v8, %v555_v7  ;;  %v456_v16 = vor.u32 %v580_v4, %v453_v6 }
  0x18   :  { %350 = vmatpush.bf16.msra.mxu3 %v528_v55  ;;  %v439_v15 = vld [vmem:[#allocation2 + $0x18] sm:$0xf]  ;;  %v578_v17 = vld [vmem:[#allocation2 + $0x20] sm:$0xf0]  ;;  %v543_v18 = vld [vmem:[#allocation2 + $0xe0] sm:$0xf]  ;;  %v496_v22 = vor.u32 %v591_v13, %v495_v12 }
  0x19   :  { %305 = vmatpush.bf16.msra.mxu0 %v464_v60  ;;  %333 = vmatpush.bf16.msra.mxu2 %v468_v0  ;;  %v603_v19 = vld [vmem:[#allocation2 + $0xe8] sm:$0xf0]  ;;  %v577_v20 = vld [vmem:[#allocation2 + $0x1c] sm:$0xf]  ;;  %v441_v21 = vld [vmem:[#allocation2 + $0x24] sm:$0xf0]  ;;  %v440_v23 = vor.u32 %v578_v17, %v439_v15 }
  0x1a   :  { %569 = vmatmul.msk.bf16.vlgmr.msra.gmra.mxu1 %vm287_vm1, %v673_v5  ;;  %v483_v24 = vld [vmem:[#allocation2 + $0x68] sm:$0xf]  ;;  %v588_v25 = vld [vmem:[#allocation2 + $0x70] sm:$0xf0]  ;;  %v544_v26 = vor.u32 %v603_v19, %v543_v18  ;;  %v427_v27 = vld [vmem:[#allocation2] sm:$0xf]  ;;  %v444_v28 = vor.u32 %v577_v20, %v441_v21 }
  0x1b   :  { %357 = vmatpush.bf16.msrb.mxu1 %v520_v56  ;;  %570 = vmatmul.msk.bf16.vlgmr.msra.gmra.mxu3 %vm287_vm1, %v673_v5  ;;  %v575_v29 = vld [vmem:[#allocation2 + $0x8] sm:$0xf0]  ;;  %v531_v30 = vld [vmem:[#allocation2 + $0xc8] sm:$0xf]  ;;  %v600_v31 = vld [vmem:[#allocation2 + $0xd0] sm:$0xf0]  ;;  %v484_v34 = vor.u32 %v588_v25, %v483_v24 }
  0x1c   :  { %375 = vmatpush.bf16.msrb.mxu3 %v299_v10  ;;  %v574_v32 = vld [vmem:[#allocation2 + $0x4] sm:$0xf]  ;;  %v429_v33 = vld [vmem:[#allocation2 + $0xc] sm:$0xf0]  ;;  %v428_v36 = vor.u32 %v575_v29, %v427_v27  ;;  %v585_v37 = vld [vmem:[#allocation2 + $0x58] sm:$0xf0]  ;;  %v532_v38 = vor.u32 %v600_v31, %v531_v30 }
  0x1d   :  { %306 = vmatpush.bf16.msra.mxu0 %v452_v11  ;;  %334 = vmatpush.bf16.msra.mxu2 %v456_v16  ;;  %v471_v35 = vld [vmem:[#allocation2 + $0x50] sm:$0xf]  ;;  %v419_v39 = vld [vmem:[%s703_s0] sm:$0xf]  ;;  %v573_v40 = vld [vmem:[%s703_s0 + $0x4] sm:$0xf0]  ;;  %v432_v41 = vor.u32 %v574_v32, %v429_v33 }
  0x1e   :  { %v472_v42 = vor.u32 %v585_v37, %v471_v35  ;;  %v420_v43 = vor.u32 %v573_v40, %v419_v39  ;;  %v459_v44 = vld [vmem:[#allocation2 + $0x38] sm:$0xf]  ;;  %v582_v45 = vld [vmem:[#allocation2 + $0x40] sm:$0xf0]  ;;  %v447_v47 = vld [vmem:[#allocation2 + $0x20] sm:$0xf] }
  0x1f   :  { %358 = vmatpush.bf16.msrb.mxu1 %v508_v9  ;;  %v460_v46 = vor.u32 %v582_v45, %v459_v44  ;;  %v579_v48 = vld [vmem:[#allocation2 + $0x28] sm:$0xf0]  ;;  %v435_v50 = vld [vmem:[#allocation2 + $0x8] sm:$0xf]  ;;  %v576_v51 = vld [vmem:[#allocation2 + $0x10] sm:$0xf0] }
  0x20   :  { %376 = vmatpush.bf16.msrb.mxu3 %v556_v14  ;;  %v448_v49 = vor.u32 %v579_v48, %v447_v47  ;;  %v436_v52 = vor.u32 %v576_v51, %v435_v50  ;;  %v81_v54 = vld [vmem:[%s705_s2] sm:$0x7] }
  0x21   :  { %307 = vmatpush.bf16.msra.mxu0 %v440_v23  ;;  %335 = vmatpush.bf16.msra.mxu2 %v444_v28  ;;  %v83_v56 = vperm.slane %v81_v54, 0  ;;  %v84_v60 = vperm.slane %v81_v54, 1  ;;  %v85_v6 = vperm.slane %v81_v54, 2 }
  0x23   :  { %359 = vmatpush.bf16.msrb.mxu1 %v496_v22 }
  0x24   :  { %377 = vmatpush.bf16.msrb.mxu3 %v544_v26 }
  0x25   :  { %308 = vmatpush.bf16.msra.mxu0 %v428_v36  ;;  %336 = vmatpush.bf16.msra.mxu2 %v432_v41 }
  0x27   :  { %360 = vmatpush.bf16.msrb.mxu1 %v484_v34 }
  0x28   :  { %378 = vmatpush.bf16.msrb.mxu3 %v532_v38  ;;  %309 = vmatmul.bf16.vlgmr.msra.gmra.mxu0 %v420_v43 }
  0x29   :  { %337 = vmatmul.bf16.vlgmr.msra.gmra.mxu2 %v420_v43 }
  0x2b   :  { %361 = vmatpush.bf16.msrb.mxu1 %v472_v42  ;;  %571 = vmatmul.msk.bf16.vlgmr.msrb.gmra.mxu3 %vm287_vm1, %v673_v5 }
  0x2f   :  { %362 = vmatpush.bf16.msrb.mxu1 %v460_v46 }
  0x33   :  { %363 = vmatpush.bf16.msrb.mxu1 %v448_v49 }
  0x37   :  { %364 = vmatpush.bf16.msrb.mxu1 %v436_v52 }
  0x3a   :  { %365 = vmatmul.bf16.vlgmr.msrb.gmra.mxu1 %v420_v43 }
  0x97   :  { %v324_v55 = vpop.f32.mrf.mxu1 }
  0x9e   :  { %v352_v53 = vpop.f32.mrf.mxu3 }
  0x9f   :  { %v326_v62 = vpop.f32.mrf.mxu1 }
  0xa5   :  { %v310_v57 = vpop.f32.mrf.mxu0 }
  0xa6   :  { %v311_v58 = vadd.f32 %v310_v57, %v83_v56  ;;  %v354_v59 = vpop.f32.mrf.mxu3 }
  0xa8   :  { %v325_v61 = vadd.f32 %v324_v55, %v311_v58 }
  0xaa   :  { %v391_v2 = vmul.f32 0.01, %v325_v61  ;;  %vm385_vm2 = vcmp.gt.f32.partialorder %v325_v61, 0.0 }
  0xac   :  { %v338_v63 = vpop.f32.mrf.mxu2  ;;  %v397_v7 = vsel %vm385_vm2, %v325_v61, %v391_v2 }
  0xad   :  { %v339_v0 = vadd.f32 %v338_v63, %v84_v60  ;;  %v312_v1 = vpop.f32.mrf.mxu0 }
  0xae   :  { %v313_v4 = vadd.f32 %v312_v1, %v83_v56  ;;  %v380_v10 = vpop.f32.mrf.mxu3 }
  0xaf   :  { %v353_v3 = vadd.f32 %v352_v53, %v339_v0 }
  0xb0   :  { %v327_v9 = vadd.f32 %v326_v62, %v313_v4 }
  0xb1   :  { %vm386_vm3 = vcmp.gt.f32.partialorder %v353_v3, 0.0  ;;  %v392_v5 = vmul.f32 0.01, %v353_v3 }
  0xb2   :  { %v394_v16 = vmul.f32 0.01, %v327_v9  ;;  %vm388_vm4 = vcmp.gt.f32.partialorder %v327_v9, 0.0 }
  0xb3   :  { %v398_v8 = vsel %vm386_vm3, %v353_v3, %v392_v5 }
  0xb4   :  { %v403_v11 = vpack.c.bf16 %v398_v8, %v397_v7  ;;  %v340_v12 = vpop.f32.mrf.mxu2  ;;  %v400_v21 = vsel %vm388_vm4, %v327_v9, %v394_v16 }
  0xb5   :  { %v341_v14 = vadd.f32 %v340_v12, %v84_v60 }
  0xb6   :  { %407 = vst [vmem:[%s706_s3] sm:$0xff] %v403_v11  ;;  %v382_v28 = vpop.f32.mrf.mxu3 }
  0xb7   :  { %v366_v13 = vpop.f32.mrf.mxu1  ;;  %v355_v17 = vadd.f32 %v354_v59, %v341_v14 }
  0xb8   :  { %v367_v15 = vadd.f32 %v366_v13, %v85_v6 }
  0xb9   :  { %vm389_vm5 = vcmp.gt.f32.partialorder %v355_v17, 0.0  ;;  %v395_v19 = vmul.f32 0.01, %v355_v17 }
  0xba   :  { %v381_v18 = vadd.f32 %v380_v10, %v367_v15 }
  0xbb   :  { %v401_v22 = vsel %vm389_vm5, %v355_v17, %v395_v19 }
  0xbc   :  { %vm387_vm6 = vcmp.gt.f32.partialorder %v381_v18, 0.0  ;;  %v393_v20 = vmul.f32 0.01, %v381_v18  ;;  %v405_v24 = vpack.c.bf16 %v401_v22, %v400_v21 }
  0xbe   :  { %v399_v23 = vsel %vm387_vm6, %v381_v18, %v393_v20  ;;  %410 = vst [vmem:[%s706_s3 + $0xc] sm:$0xff] %v405_v24 }
  0xbf   :  { %v404_v25 = vpack.c.bf16 %v399_v23, %v399_v23  ;;  %v368_v26 = vpop.f32.mrf.mxu1 }
  0xc0   :  { %v369_v27 = vadd.f32 %v368_v26, %v85_v6 }
  0xc1   :  { %409 = vst.msk [vmem:[%s706_s3 + $0x8] sm:$0xf] %vm408_vm7, %v404_v25 }
  0xc2   :  { %v383_v29 = vadd.f32 %v382_v28, %v369_v27 }
  0xc4   :  { %vm390_vm8 = vcmp.gt.f32.partialorder %v383_v29, 0.0  ;;  %v396_v30 = vmul.f32 0.01, %v383_v29 }
  0xc6   :  { %v402_v31 = vsel %vm390_vm8, %v383_v29, %v396_v30 }
  0xc7   :  { %v406_v32 = vpack.c.bf16 %v402_v31, %v402_v31 }
  0xc9   :  { %411 = vst.msk [vmem:[%s706_s3 + $0x14] sm:$0xf] %vm408_vm7, %v406_v32 }
  0xca   :  { %416 = vsyncpa [#allocation3], 1 }

</bundles_post_ra>
